<compile_context>
chip_gen: v7x
topology: tpu7x:2x2x1
jax: 0.10.0
libtpu: 0.0.40
codegen_flags: <defaults>
</compile_context>

<pallas_src>
import jax
import jax.numpy as jnp
from jax.experimental import pallas as pl
from jax.experimental.pallas import tpu as pltpu


def dense_attn_kernel(hs_ref, sqi_ref, pos_ref,
                      wq_ref, bq_ref, wk_ref, bk_ref, wv_ref, bv_ref,
                      ctx_ref, attn_ref):
    # hs_ref : (B, S, H)      sqi_ref: (B*S, 1)      pos_ref: (1, S, H)
    # wq/wv  : (H, H)  (pre-transposed)              wk: (1, H)   biases: (1, H)
    # ctx_ref: (B, H)         attn_ref: (B, S, S)
    B, S, H = hs_ref.shape
    BS = B * S

    # Positional-encoding add (broadcast over batch), flatten so Q/V are single
    # MXU matmuls over the whole batch.
    x = (hs_ref[...] + pos_ref[...]).reshape(BS, H)                     # (B*S, H)

    # Q / V projections (weights already transposed -> no in-kernel .T).
    q = jnp.dot(x, wq_ref[...], preferred_element_type=jnp.float32) + bq_ref[...]
    v = jnp.dot(x, wv_ref[...], preferred_element_type=jnp.float32) + bv_ref[...]

    # K projection: Linear(1, H) on the permuted sqi sequence.
    # (B*S, 1) * (1, H) outer product + bias -> cheap VPU broadcast multiply-add.
    k = sqi_ref[...] * wk_ref[...] + bk_ref[...]                        # (B*S, H)

    q3 = q.reshape(B, S, H)
    k3 = k.reshape(B, S, H)
    v3 = v.reshape(B, S, H)

    # Scaled dot-product attention, batched over B in one kernel invocation.
    scale = 1.0 / (H ** 0.5)
    scores = jnp.einsum("bqh,bkh->bqk", q3, k3,
                        preferred_element_type=jnp.float32) * scale     # (B, S, S)
    scores = scores - jnp.max(scores, axis=-1, keepdims=True)
    e = jnp.exp(scores)
    denom = jnp.sum(e, axis=-1, keepdims=True)
    attn = e * pl.reciprocal(denom, approx=True)                        # EUP slot
    # TODO(synk): nn.Dropout(0.4) on attn_weights treated as eval-mode identity
    # (deterministic forward pass).

    out = jnp.einsum("bqk,bkh->bqh", attn, v3,
                     preferred_element_type=jnp.float32)                # (B, S, H)

    ctx_ref[...] = jnp.mean(out, axis=1).astype(ctx_ref.dtype)          # (B, H)
    attn_ref[...] = attn.astype(attn_ref.dtype)                         # (B, S, S)


def dense_forward(hidden_states, sqi_sequence, params):
    B, S, H = hidden_states.shape

    # Wrapper-side layout plumbing (one-time / tiny): pre-transpose weights,
    # pre-permute + flatten sqi so the kernel does zero cross-lane transposes.
    wq_t = params["wq"].T                                    # (H, H)
    wv_t = params["wv"].T                                    # (H, H)
    wk_t = params["wk"].reshape(1, H)                        # Linear(1,H).weight (H,1) -> (1,H)
    bq = params["bq"].reshape(1, H)
    bk = params["bk"].reshape(1, H)
    bv = params["bv"].reshape(1, H)
    pos = params["pos"]                                      # (1, S, H)
    sqi_flat = jnp.transpose(sqi_sequence, (0, 2, 1)).reshape(B * S, 1)

    # Whole batch in one grid step (B, S, H are far below one VMEM tile).
    # For large B, tile the batch axis instead: grid=(B // TB,) with TB >= 8,
    # keeping that axis "parallel" so it shards across TensorCores.
    grid_spec = pltpu.PrefetchScalarGridSpec(
        num_scalar_prefetch=0,
        grid=(1,),
        in_specs=[
            pl.BlockSpec((B, S, H),   lambda i: (0, 0, 0)),  # hidden_states
            pl.BlockSpec((B * S, 1),  lambda i: (0, 0)),     # sqi (permuted+flat)
            pl.BlockSpec((1, S, H),   lambda i: (0, 0, 0)),  # positional_encoding
            pl.BlockSpec((H, H),      lambda i: (0, 0)),     # wq^T
            pl.BlockSpec((1, H),      lambda i: (0, 0)),     # bq
            pl.BlockSpec((1, H),      lambda i: (0, 0)),     # wk (as row)
            pl.BlockSpec((1, H),      lambda i: (0, 0)),     # bk
            pl.BlockSpec((H, H),      lambda i: (0, 0)),     # wv^T
            pl.BlockSpec((1, H),      lambda i: (0, 0)),     # bv
        ],
        out_specs=[
            pl.BlockSpec((B, H),      lambda i: (0, 0)),     # context_vector (B, H)
            pl.BlockSpec((B, S, S),   lambda i: (0, 0, 0)),  # attn_weights   (B, S, S)
        ],
    )

    ctx, attn = pl.pallas_call(
        dense_attn_kernel,
        out_shape=(
            jax.ShapeDtypeStruct((B, H), jnp.float32),
            jax.ShapeDtypeStruct((B, S, S), jnp.float32),
        ),
        grid_spec=grid_spec,
        compiler_params=pltpu.CompilerParams(dimension_semantics=("parallel",)),
    )(hidden_states, sqi_flat, pos, wq_t, bq, wk_t, bk, wv_t, bv)

    return ctx, attn


def dense_forward_ref(hidden_states, sqi_sequence, params):
    """Pure-JAX reference matching the PyTorch forward (eval mode)."""
    H = hidden_states.shape[-1]
    x = hidden_states + params["pos"]
    q = x @ params["wq"].T + params["bq"]
    v = x @ params["wv"].T + params["bv"]
    sqi = jnp.transpose(sqi_sequence, (0, 2, 1))            # (B, S, 1)
    k = sqi @ params["wk"].T + params["bk"]                 # (B, S, H)
    scores = jnp.einsum("bsh,bth->bst", q, k) / (H ** 0.5)
    attn = jax.nn.softmax(scores, axis=-1)
    out = jnp.einsum("bst,bth->bsh", attn, v)
    return out.mean(axis=1), attn


if __name__ == "__main__":
    B, S, H = 2, 8, 32        # batch, sqi_dim, hidden_dim

    key = jax.random.PRNGKey(0)
    ks = jax.random.split(key, 9)
    params = {
        "wq":  jax.random.normal(ks[0], (H, H), jnp.float32) * 0.1,
        "bq":  jax.random.normal(ks[1], (H,),   jnp.float32) * 0.1,
        "wk":  jax.random.normal(ks[2], (H, 1), jnp.float32) * 0.1,
        "bk":  jax.random.normal(ks[3], (H,),   jnp.float32) * 0.1,
        "wv":  jax.random.normal(ks[4], (H, H), jnp.float32) * 0.1,
        "bv":  jax.random.normal(ks[5], (H,),   jnp.float32) * 0.1,
        # nn.Parameter(torch.zeros(...)) -> small random values so the pos-enc
        # add is actually exercised; set to zeros to match torch init exactly.
        "pos": jax.random.normal(ks[6], (1, S, H), jnp.float32) * 0.1,
    }

    hidden_states = jax.random.normal(ks[7], (B, S, H), jnp.float32)
    sqi_sequence = jax.random.normal(ks[8], (B, 1, S), jnp.float32)

    ctx, attn = dense_forward(hidden_states, sqi_sequence, params)
    jax.block_until_ready((ctx, attn))

    ctx_ref, attn_ref = dense_forward_ref(hidden_states, sqi_sequence, params)
    assert ctx.shape == (B, H) and attn.shape == (B, S, S)
    # Tolerance accounts for the EUP approximate reciprocal in the softmax.
    assert jnp.allclose(ctx, ctx_ref, rtol=2e-3, atol=2e-3)
    assert jnp.allclose(attn, attn_ref, rtol=2e-3, atol=2e-3)

    print("KERNEL_OK")
</pallas_src>

<mosaic_0001>
module attributes {stable_mosaic.version = 11 : i64} {
  func.func @dense_attn_kernel(%arg0: i32, %arg1: memref<2x8x32xf32, #tpu.memory_space<vmem>>, %arg2: memref<16x1xf32, #tpu.memory_space<vmem>>, %arg3: memref<1x8x32xf32, #tpu.memory_space<vmem>>, %arg4: memref<32x32xf32, #tpu.memory_space<vmem>>, %arg5: memref<1x32xf32, #tpu.memory_space<vmem>>, %arg6: memref<1x32xf32, #tpu.memory_space<vmem>>, %arg7: memref<1x32xf32, #tpu.memory_space<vmem>>, %arg8: memref<32x32xf32, #tpu.memory_space<vmem>>, %arg9: memref<1x32xf32, #tpu.memory_space<vmem>>, %arg10: memref<2x32xf32, #tpu.memory_space<vmem>>, %arg11: memref<2x8x8xf32, #tpu.memory_space<vmem>>) attributes {dimension_semantics = [#tpu.dimension_semantics<parallel>], iteration_bounds = array<i64: 1>, scalar_prefetch = 0 : i64, scratch_operands = 0 : i64, tpu.core_type = #tpu.core_type<tc>, window_params = [{pipeline_mode = #tpu.pipeline_mode<synchronous>, transform_indices = @transform_0, window_bounds = array<i64: 2, 8, 32>}, {pipeline_mode = #tpu.pipeline_mode<synchronous>, transform_indices = @transform_1, window_bounds = array<i64: 16, 1>}, {pipeline_mode = #tpu.pipeline_mode<synchronous>, transform_indices = @transform_2, window_bounds = array<i64: 1, 8, 32>}, {pipeline_mode = #tpu.pipeline_mode<synchronous>, transform_indices = @transform_3, window_bounds = array<i64: 32, 32>}, {pipeline_mode = #tpu.pipeline_mode<synchronous>, transform_indices = @transform_4, window_bounds = array<i64: 1, 32>}, {pipeline_mode = #tpu.pipeline_mode<synchronous>, transform_indices = @transform_5, window_bounds = array<i64: 1, 32>}, {pipeline_mode = #tpu.pipeline_mode<synchronous>, transform_indices = @transform_6, window_bounds = array<i64: 1, 32>}, {pipeline_mode = #tpu.pipeline_mode<synchronous>, transform_indices = @transform_7, window_bounds = array<i64: 32, 32>}, {pipeline_mode = #tpu.pipeline_mode<synchronous>, transform_indices = @transform_8, window_bounds = array<i64: 1, 32>}, {pipeline_mode = #tpu.pipeline_mode<synchronous>, transform_indices = @transform_9, window_bounds = array<i64: 2, 32>}, {pipeline_mode = #tpu.pipeline_mode<synchronous>, transform_indices = @transform_10, window_bounds = array<i64: 2, 8, 8>}]} {
    %c0 = arith.constant 0 : index
    %c0_0 = arith.constant 0 : index
    %c0_1 = arith.constant 0 : index
    %0 = vector.load %arg1[%c0, %c0_0, %c0_1] : memref<2x8x32xf32, #tpu.memory_space<vmem>>, vector<2x8x32xf32>
    %c0_2 = arith.constant 0 : index
    %c0_3 = arith.constant 0 : index
    %c0_4 = arith.constant 0 : index
    %1 = vector.load %arg3[%c0_2, %c0_3, %c0_4] : memref<1x8x32xf32, #tpu.memory_space<vmem>>, vector<1x8x32xf32>
    %2 = vector.broadcast %1 : vector<1x8x32xf32> to vector<2x8x32xf32>
    %3 = arith.addf %0, %2 : vector<2x8x32xf32>
    %4 = vector.shape_cast %3 : vector<2x8x32xf32> to vector<16x32xf32>
    %c0_5 = arith.constant 0 : index
    %c0_6 = arith.constant 0 : index
    %5 = vector.load %arg4[%c0_5, %c0_6] : memref<32x32xf32, #tpu.memory_space<vmem>>, vector<32x32xf32>
    %cst = arith.constant dense<0.000000e+00> : vector<16x32xf32>
    %6 = tpu.matmul %4, %5, %cst {dimension_numbers = #tpu.dot_dimension_numbers<[1], [0], [0], [1], [0, 0, 1, 1], [], []>} : vector<16x32xf32>, vector<32x32xf32>, vector<16x32xf32> -> vector<16x32xf32>
    %c0_7 = arith.constant 0 : index
    %c0_8 = arith.constant 0 : index
    %7 = vector.load %arg5[%c0_7, %c0_8] : memref<1x32xf32, #tpu.memory_space<vmem>>, vector<1x32xf32>
    %8 = vector.broadcast %7 : vector<1x32xf32> to vector<16x32xf32>
    %9 = arith.addf %6, %8 : vector<16x32xf32>
    %c0_9 = arith.constant 0 : index
    %c0_10 = arith.constant 0 : index
    %10 = vector.load %arg8[%c0_9, %c0_10] : memref<32x32xf32, #tpu.memory_space<vmem>>, vector<32x32xf32>
    %cst_11 = arith.constant dense<0.000000e+00> : vector<16x32xf32>
    %11 = tpu.matmul %4, %10, %cst_11 {dimension_numbers = #tpu.dot_dimension_numbers<[1], [0], [0], [1], [0, 0, 1, 1], [], []>} : vector<16x32xf32>, vector<32x32xf32>, vector<16x32xf32> -> vector<16x32xf32>
    %c0_12 = arith.constant 0 : index
    %c0_13 = arith.constant 0 : index
    %12 = vector.load %arg9[%c0_12, %c0_13] : memref<1x32xf32, #tpu.memory_space<vmem>>, vector<1x32xf32>
    %13 = vector.broadcast %12 : vector<1x32xf32> to vector<16x32xf32>
    %14 = arith.addf %11, %13 : vector<16x32xf32>
    %c0_14 = arith.constant 0 : index
    %c0_15 = arith.constant 0 : index
    %15 = vector.load %arg2[%c0_14, %c0_15] : memref<16x1xf32, #tpu.memory_space<vmem>>, vector<16x1xf32>
    %c0_16 = arith.constant 0 : index
    %c0_17 = arith.constant 0 : index
    %16 = vector.load %arg6[%c0_16, %c0_17] : memref<1x32xf32, #tpu.memory_space<vmem>>, vector<1x32xf32>
    %17 = vector.broadcast %15 : vector<16x1xf32> to vector<16x32xf32>
    %18 = vector.broadcast %16 : vector<1x32xf32> to vector<16x32xf32>
    %19 = arith.mulf %17, %18 : vector<16x32xf32>
    %c0_18 = arith.constant 0 : index
    %c0_19 = arith.constant 0 : index
    %20 = vector.load %arg7[%c0_18, %c0_19] : memref<1x32xf32, #tpu.memory_space<vmem>>, vector<1x32xf32>
    %21 = vector.broadcast %20 : vector<1x32xf32> to vector<16x32xf32>
    %22 = arith.addf %19, %21 : vector<16x32xf32>
    %23 = vector.shape_cast %9 : vector<16x32xf32> to vector<2x8x32xf32>
    %24 = vector.shape_cast %22 : vector<16x32xf32> to vector<2x8x32xf32>
    %25 = vector.shape_cast %14 : vector<16x32xf32> to vector<2x8x32xf32>
    "tpu.trace_start"() <{level = 10 : i32, message = "bqh,bkh->bqk"}> : () -> ()
    %cst_20 = arith.constant dense<0.000000e+00> : vector<2x8x8xf32>
    %26 = tpu.matmul %23, %24, %cst_20 {dimension_numbers = #tpu.dot_dimension_numbers<[2], [2], [1], [1], [0, 0, 0, 1, 1, 1], [0], [0]>} : vector<2x8x32xf32>, vector<2x8x32xf32>, vector<2x8x8xf32> -> vector<2x8x8xf32>
    "tpu.trace_stop"() : () -> ()
    %cst_21 = arith.constant 0.176776692 : f32
    %27 = vector.broadcast %cst_21 : f32 to vector<2x8x8xf32>
    %28 = arith.mulf %26, %27 : vector<2x8x8xf32>
    %cst_22 = arith.constant dense<0xFF800000> : vector<2x8xf32>
    %29 = vector.multi_reduction <maximumf>, %28, %cst_22 [2] : vector<2x8x8xf32> to vector<2x8xf32>
    %30 = vector.shape_cast %29 : vector<2x8xf32> to vector<2x8x1xf32>
    %31 = vector.broadcast %30 : vector<2x8x1xf32> to vector<2x8x8xf32>
    %32 = arith.subf %28, %31 : vector<2x8x8xf32>
    %33 = math.exp %32 : vector<2x8x8xf32>
    %cst_23 = arith.constant dense<0.000000e+00> : vector<2x8xf32>
    %34 = vector.multi_reduction <add>, %33, %cst_23 [2] : vector<2x8x8xf32> to vector<2x8xf32>
    %35 = vector.shape_cast %34 : vector<2x8xf32> to vector<2x8x1xf32>
    %36 = tpu.reciprocal %35 {approx = true} : vector<2x8x1xf32> -> vector<2x8x1xf32>
    %37 = vector.broadcast %36 : vector<2x8x1xf32> to vector<2x8x8xf32>
    %38 = arith.mulf %33, %37 : vector<2x8x8xf32>
    "tpu.trace_start"() <{level = 10 : i32, message = "bqk,bkh->bqh"}> : () -> ()
    %cst_24 = arith.constant dense<0.000000e+00> : vector<2x8x32xf32>
    %39 = tpu.matmul %38, %25, %cst_24 {dimension_numbers = #tpu.dot_dimension_numbers<[2], [1], [1], [2], [0, 0, 0, 1, 1, 2], [0], [0]>} : vector<2x8x8xf32>, vector<2x8x32xf32>, vector<2x8x32xf32> -> vector<2x8x32xf32>
    "tpu.trace_stop"() : () -> ()
    %cst_25 = arith.constant dense<0.000000e+00> : vector<2x32xf32>
    %40 = vector.multi_reduction <add>, %39, %cst_25 [1] : vector<2x8x32xf32> to vector<2x32xf32>
    %cst_26 = arith.constant 8.000000e+00 : f32
    %41 = vector.broadcast %cst_26 : f32 to vector<2x32xf32>
    %42 = arith.divf %40, %41 : vector<2x32xf32>
    %c0_27 = arith.constant 0 : index
    %c0_28 = arith.constant 0 : index
    %43 = vector.load %arg10[%c0_27, %c0_28] : memref<2x32xf32, #tpu.memory_space<vmem>>, vector<2x32xf32>
    tpu.vector_store %arg10[%c0_27, %c0_28], %42 {strides = array<i32>} : memref<2x32xf32, #tpu.memory_space<vmem>>, vector<2x32xf32>,
    %c0_29 = arith.constant 0 : index
    %c0_30 = arith.constant 0 : index
    %c0_31 = arith.constant 0 : index
    %44 = vector.load %arg11[%c0_29, %c0_30, %c0_31] : memref<2x8x8xf32, #tpu.memory_space<vmem>>, vector<2x8x8xf32>
    tpu.vector_store %arg11[%c0_29, %c0_30, %c0_31], %38 {strides = array<i32>} : memref<2x8x8xf32, #tpu.memory_space<vmem>>, vector<2x8x8xf32>,
    return
  }
  func.func @transform_0(%arg0: i32) -> (i32, i32, i32) {
    %c0_i32 = arith.constant 0 : i32
    %c0_i32_0 = arith.constant 0 : i32
    %c0_i32_1 = arith.constant 0 : i32
    %c0_i32_2 = arith.constant 0 : i32
    return %c0_i32, %c0_i32_0, %c0_i32_1 : i32, i32, i32
  }
  func.func @transform_1(%arg0: i32) -> (i32, i32) {
    %c0_i32 = arith.constant 0 : i32
    %c0_i32_0 = arith.constant 0 : i32
    %c0_i32_1 = arith.constant 0 : i32
    return %c0_i32, %c0_i32_0 : i32, i32
  }
  func.func @transform_2(%arg0: i32) -> (i32, i32, i32) {
    %c0_i32 = arith.constant 0 : i32
    %c0_i32_0 = arith.constant 0 : i32
    %c0_i32_1 = arith.constant 0 : i32
    %c0_i32_2 = arith.constant 0 : i32
    return %c0_i32, %c0_i32_0, %c0_i32_1 : i32, i32, i32
  }
  func.func @transform_3(%arg0: i32) -> (i32, i32) {
    %c0_i32 = arith.constant 0 : i32
    %c0_i32_0 = arith.constant 0 : i32
    %c0_i32_1 = arith.constant 0 : i32
    return %c0_i32, %c0_i32_0 : i32, i32
  }
  func.func @transform_4(%arg0: i32) -> (i32, i32) {
    %c0_i32 = arith.constant 0 : i32
    %c0_i32_0 = arith.constant 0 : i32
    %c0_i32_1 = arith.constant 0 : i32
    return %c0_i32, %c0_i32_0 : i32, i32
  }
  func.func @transform_5(%arg0: i32) -> (i32, i32) {
    %c0_i32 = arith.constant 0 : i32
    %c0_i32_0 = arith.constant 0 : i32
    %c0_i32_1 = arith.constant 0 : i32
    return %c0_i32, %c0_i32_0 : i32, i32
  }
  func.func @transform_6(%arg0: i32) -> (i32, i32) {
    %c0_i32 = arith.constant 0 : i32
    %c0_i32_0 = arith.constant 0 : i32
    %c0_i32_1 = arith.constant 0 : i32
    return %c0_i32, %c0_i32_0 : i32, i32
  }
  func.func @transform_7(%arg0: i32) -> (i32, i32) {
    %c0_i32 = arith.constant 0 : i32
    %c0_i32_0 = arith.constant 0 : i32
    %c0_i32_1 = arith.constant 0 : i32
    return %c0_i32, %c0_i32_0 : i32, i32
  }
  func.func @transform_8(%arg0: i32) -> (i32, i32) {
    %c0_i32 = arith.constant 0 : i32
    %c0_i32_0 = arith.constant 0 : i32
    %c0_i32_1 = arith.constant 0 : i32
    return %c0_i32, %c0_i32_0 : i32, i32
  }
  func.func @transform_9(%arg0: i32) -> (i32, i32) {
    %c0_i32 = arith.constant 0 : i32
    %c0_i32_0 = arith.constant 0 : i32
    %c0_i32_1 = arith.constant 0 : i32
    return %c0_i32, %c0_i32_0 : i32, i32
  }
  func.func @transform_10(%arg0: i32) -> (i32, i32, i32) {
    %c0_i32 = arith.constant 0 : i32
    %c0_i32_0 = arith.constant 0 : i32
    %c0_i32_1 = arith.constant 0 : i32
    %c0_i32_2 = arith.constant 0 : i32
    return %c0_i32, %c0_i32_0, %c0_i32_1 : i32, i32, i32
  }
}

</mosaic_0001>

<bundles_post_ra>
// kernel: tpu_custom_call.1
= control target key start
LH: loop header
LB: loop body
LE: loop exit
PB: predicated region body
PF: predicated region fallthrough
CT: control target
= control target key end

     0   :  { %16 = vsyncpa [#allocation3], 0  ;;  %s1041_s0 = inlined_call_operand.hbm [shape: f32[2,8,32], index: 0, kind: input, shape index: {}]   ;;  %s1042_s1 = inlined_call_operand.vmem [shape: f32[16,1], index: 1, kind: input, shape index: {}]   ;;  %s1043_s2 = inlined_call_operand.vmem [shape: f32[1,8,32], index: 2, kind: input, shape index: {}]   ;;  %s1044_s3 = inlined_call_operand.hbm [shape: f32[32,32], index: 3, kind: input, shape index: {}]   ;;  %s1045_s4 = inlined_call_operand.vmem [shape: f32[1,32], index: 4, kind: input, shape index: {}]   ;;  %s1046_s5 = inlined_call_operand.vmem [shape: f32[1,32], index: 5, kind: input, shape index: {}]   ;;  %s1047_s6 = inlined_call_operand.vmem [shape: f32[1,32], index: 6, kind: input, shape index: {}]   ;;  %s1048_s7 = inlined_call_operand.vmem [shape: f32[32,32], index: 7, kind: input, shape index: {}]   ;;  %s1049_s8 = inlined_call_operand.vmem [shape: f32[1,32], index: 8, kind: input, shape index: {}]   ;;  %s1050_s9 = inlined_call_operand.hbm [shape: f32[2,32], index: 9, kind: output, shape index: {0}]   ;;  %s1051_s10 = inlined_call_operand.hbm [shape: f32[2,8,8], index: 10, kind: output, shape index: {1}]  }
   0x1   :  { %17 = vsyncpa [#allocation6], 0 }
   0x2   :  { %18 = vsyncpa [#allocation4], 0 }
   0x3   :  { %19 = vsyncpa [#allocation9], 0  ;;  %s865_s13 = smov [#allocation2]   ;;  %s769_s17 = scalar_lea.hbm %s1041_s0, 256 }
   0x4   :  { %s25_s14 = sshll.u32 %s865_s13, 4  ;;  %p770_p0 = scmp.ne.s32.totalorder %s1041_s0, %s769_s17  ;;  %s26_s14 = int_to_ptr.vmem [resolvable:$true] %s25_s14 }
   0x5   :  { %p773_p1 = scmp.lt.u32.totalorder %s769_s17, %s1041_s0 }
   0x7   :  { %p775_p2 = pnand %p773_p1, %p770_p0 }
   0x9   :  { %778 = shalt.err (!%p775_p2)
}
   0xa   :  { %s779_s22 = scalar_lea.vmem %s26_s14, 256  ;;  %p784_p4 = scmp.lt.s32.totalorder %s26_s14, %s26_s14 }
   0xb   :  { %p780_p3 = scmp.ne.s32.totalorder %s26_s14, %s779_s22  ;;  %p785_p5 = scmp.lt.s32.totalorder %s779_s22, %s779_s22 }
   0xd   :  { %p786_p6 = por %p785_p5, %p784_p4 }
   0xf   :  { %p787_p7 = pnand %p786_p6, %p780_p3 }
  0x11   :  { %790 = shalt.err (!%p787_p7)
}
  0x12   :  { %s866_s23 = smov 128   ;;  %s867_s24 = smov 8  }
  0x13   :  { %31 = dma.hbm_to_vmem [thread:$0]  %s1041_s0, 256, %s26_s14, [#allocation3], %s866_s23, %s866_s23, %s867_s24  }
  0x14   :  { %s868_s27 = smov [#allocation5]   ;;  %s791_s11 = scalar_lea.hbm %s1044_s3, 512 }
  0x15   :  { %s41_s28 = sshll.u32 %s868_s27, 4  ;;  %p792_p8 = scmp.ne.s32.totalorder %s1044_s3, %s791_s11  ;;  %s42_s28 = int_to_ptr.vmem [resolvable:$true] %s41_s28 }
  0x16   :  { %p795_p9 = scmp.lt.u32.totalorder %s791_s11, %s1044_s3 }
  0x18   :  { %p797_p10 = pnand %p795_p9, %p792_p8 }
  0x1a   :  { %800 = shalt.err (!%p797_p10)
}
  0x1b   :  { %s801_s17 = scalar_lea.vmem %s42_s28, 512  ;;  %p806_p12 = scmp.lt.s32.totalorder %s42_s28, %s42_s28 }
  0x1c   :  { %p802_p11 = scmp.ne.s32.totalorder %s42_s28, %s801_s17  ;;  %p807_p13 = scmp.lt.s32.totalorder %s801_s17, %s801_s17 }
  0x1e   :  { %p808_p0 = por %p807_p13, %p806_p12 }
  0x20   :  { %p809_p1 = pnand %p808_p0, %p802_p11 }
  0x22   :  { %812 = shalt.err (!%p809_p1)
}
  0x23   :  { %47 = dma.hbm_to_vmem [thread:$0]  %s1044_s3, 512, %s42_s28, [#allocation6], %s866_s23, %s866_s23, %s867_s24  }
  0x24   :  { %857 = dma.done.wait [#allocation3], 256  }
  0x25   :  { %858 = vsyncadd [#allocation3], 4294967040 }
  0x26   :  { %859 = dma.done.wait [#allocation6], 512  }
  0x27   :  { %860 = vsyncadd [#allocation6], 4294966784  ;;  %v869_v0 = vmov 0   ;;  %v69_v1 = vld [vmem:[#allocation5] sm:$0xff]  ;;  %v70_v2 = vld [vmem:[#allocation5 + $0x8] sm:$0xff]  ;;  %vm80_vm0 = vcmask 261120  }
  0x28   :  { %760 = vset.pattern.permute.xlu0 %v869_v0  ;;  %v71_v3 = vld [vmem:[#allocation5 + $0x10] sm:$0xff]  ;;  %v735_v4 = vpack.c.bf16 %v70_v2, %v69_v1  ;;  %v72_v5 = vld [vmem:[#allocation5 + $0x18] sm:$0xff]  ;;  %v164_v13 = vld [vmem:[%s1048_s7 + $0x10] sm:$0xff]  ;;  %v870_v20 = vmov 0.0   ;;  %vm871_vm1 = vmmov 0   ;;  %vm432_vm2 = vcmask 64512  }
  0x29   :  { %v64_v6 = vld [vmem:[#allocation2] sm:$0xff]  ;;  %v739_v7 = vpack.c.bf16 %v72_v5, %v71_v3  ;;  %v163_v12 = vld [vmem:[%s1048_s7 + $0x8] sm:$0xff]  ;;  %v165_v17 = vld [vmem:[%s1048_s7 + $0x18] sm:$0xff] }
  0x2a   :  { %v66_v8 = vld [vmem:[%s1043_s2] sm:$0xff]  ;;  %736 = vmatprep.subr.bf16.mxu0 %v735_v4  ;;  %v65_v14 = vld [vmem:[#allocation2 + $0x8] sm:$0xff]  ;;  %v747_v18 = vpack.c.bf16 %v165_v17, %v164_v13 }
  0x2b   :  { %v248_v9 = vld [vmem:[%s1042_s1] sm:$0xff]  ;;  %v67_v10 = vadd.f32 %v66_v8, %v64_v6  ;;  %738 = vmatpush3.bf16.msra.mxu0 %v735_v4  ;;  %v249_v15 = vld [vmem:[%s1042_s1 + $0x8] sm:$0xff]  ;;  %v68_v19 = vadd.f32 %v66_v8, %v65_v14 }
  0x2c   :  { %253 = vperm.xlu0 %760, %v248_v9   ;;  %v162_v11 = vld [vmem:[%s1048_s7] sm:$0xff]  ;;  %740 = vmatprep.subr.bf16.mxu0 %v739_v7 }
  0x2d   :  { %v743_v16 = vpack.c.bf16 %v163_v12, %v162_v11  ;;  %701 = vmatprep.mubr.msk.f32.mxu0 %vm80_vm0, %v67_v10  ;;  %712 = vmatprep.mubr.msk.f32.mxu1 %vm80_vm0, %v67_v10  ;;  %v665_v21 = vld [vmem:[%s1046_s5] ss:$0 sm:$0xff] }
  0x2e   :  { %v666_v22 = vld [vmem:[%s1047_s6] ss:$0 sm:$0xff] }
  0x2f   :  { %744 = vmatprep.subr.bf16.mxu1 %v743_v16  ;;  %742 = vmatpush3.bf16.msra.mxu0 %v739_v7  ;;  %v659_v29 = vld [vmem:[%s1045_s4] ss:$0 sm:$0xff]  ;;  %s872_s4 = smov [#allocation8]  }
  0x30   :  { %258 = vperm.xlu0 %760, %v249_v15   ;;  %746 = vmatpush3.bf16.msra.mxu1 %v743_v16  ;;  %v662_v33 = vld [vmem:[%s1049_s8] ss:$0 sm:$0xff]  ;;  %s642_s8 = sshll.u32 %s872_s4, 4  ;;  %s643_s8 = int_to_ptr.vmem [resolvable:$true] %s642_s8 }
  0x31   :  { %748 = vmatprep.subr.bf16.mxu1 %v747_v18  ;;  %715 = vmatprep.subr.mxu0 %v870_v20  ;;  %s813_s17 = scalar_lea.vmem %s643_s8, 256  ;;  %p818_p3 = scmp.lt.s32.totalorder %s643_s8, %s643_s8 }
  0x32   :  { %702 = vmatmul.mubr.msk.f32.vlgmr.msra.gmra.mrb[0].mxu0 %vm80_vm0, %v68_v19  ;;  %p814_p2 = scmp.ne.s32.totalorder %s643_s8, %s813_s17  ;;  %p819_p4 = scmp.lt.s32.totalorder %s813_s17, %s813_s17 }
  0x33   :  { %717 = vmatprep.mubr.msk.f32.mxu0 %vm871_vm1, %v870_v20 }
  0x34   :  { %750 = vmatpush3.bf16.msra.mxu1 %v747_v18  ;;  %p820_p5 = por %p819_p4, %p818_p3 }
  0x35   :  { %720 = vmatprep.subr.mxu1 %v870_v20 }
  0x36   :  { %p821_p6 = pnand %p820_p5, %p814_p2 }
  0x37   :  { %713 = vmatmul.mubr.msk.f32.vlgmr.msra.gmra.mrb[0].mxu1 %vm80_vm0, %v68_v19 }
  0x38   :  { %722 = vmatprep.mubr.msk.f32.mxu1 %vm871_vm1, %v870_v20 }
  0xab   :  { %v254_v23 = vpop.permute.xlu0 %253 }
  0xac   :  { %v267_v24 = vmul.f32 %v665_v21, %v254_v23 }
  0xae   :  { %v276_v25 = vadd.f32 %v666_v22, %v267_v24 }
  0xaf   :  { %v259_v26 = vpop.permute.xlu0 %258 }
  0xb0   :  { %v268_v27 = vmul.f32 %v665_v21, %v259_v26  ;;  %716 = vmatpush3.xpose.msk.msra.mxu0 %vm80_vm0, %v276_v25 }
  0xb1   :  { %725 = vmatprep.subr.mxu0 %v870_v20 }
  0xb2   :  { %v277_v28 = vadd.f32 %v666_v22, %v268_v27 }
  0xb4   :  { %721 = vmatpush3.xpose.msk.msra.mxu1 %vm80_vm0, %v277_v28 }
  0xb5   :  { %730 = vmatprep.subr.mxu1 %v870_v20 }
 0x105   :  { %v703_v30 = vpop.f32.mrb[0].mxu0 }
 0x106   :  { %v159_v31 = vadd.f32 %v703_v30, %v659_v29  ;;  %v153_v32 = vpop.f32.mrb[1].mxu0 }
 0x107   :  { %v154_v34 = vadd.f32 %v659_v29, %v153_v32 }
 0x108   :  { %723 = vmatmul.mubr.msk.f32.vlgmr.msra.gmra.mrb[2].mxu1 %vm80_vm0, %v159_v31 }
 0x109   :  { %718 = vmatmul.mubr.msk.f32.vlgmr.msra.gmra.mrb[2].mxu0 %vm80_vm0, %v154_v34  ;;  %732 = vmatprep.mubr.msk.f32.mxu1 %vm871_vm1, %v870_v20 }
 0x10a   :  { %v714_v35 = vpop.f32.mrb[0].mxu1  ;;  %727 = vmatprep.mubr.msk.f32.mxu0 %vm871_vm1, %v870_v20 }
 0x10b   :  { %v245_v36 = vadd.f32 %v714_v35, %v662_v33  ;;  %v239_v37 = vpop.f32.mrb[1].mxu1 }
 0x10c   :  { %v240_v38 = vadd.f32 %v662_v33, %v239_v37 }
 0x10d   :  { %731 = vmatpush3.msra.mxu1 %v245_v36 }
 0x10e   :  { %726 = vmatpush3.msra.mxu0 %v240_v38 }
 0x1db   :  { %v426_v39 = vpop.f32.mrb[2].mxu1 }
 0x1dc   :  { %v350_v40 = vpop.f32.mrb[2].mxu0  ;;  %v724_v41 = vpop.f32.mrb[3].mxu1  ;;  %v431_v44 = vmul.f32 0.17677669, %v426_v39 }
 0x1dd   :  { %v430_v42 = vmul.f32 0.17677669, %v350_v40  ;;  %v719_v43 = vpop.f32.mrb[3].mxu0 }
 0x1de   :  { %v436_v46 = vsel %vm432_vm2, %v431_v44, -inf }
 0x1df   :  { %v433_v45 = vsel %vm432_vm2, %v430_v42, -inf }
 0x1e0   :  { %434 = vmax.xlane.f32.xlu1 %v433_v45 }
 0x1e4   :  { %437 = vmax.xlane.f32.xlu1 %v436_v46 }
 0x26d   :  { %v435_v47 = vpop.xlane.xlu1 %434 }
 0x26e   :  { %v439_v48 = vsub.f32 %v430_v42, %v435_v47 }
 0x270   :  { %v441_v49 = vmul.f32 1.442695, %v439_v48 }
 0x271   :  { %v438_v50 = vpop.xlane.xlu1 %437 }
 0x272   :  { %761 = vpow2.f32 %v441_v49  ;;  %v440_v51 = vsub.f32 %v431_v44, %v438_v50 }
 0x274   :  { %v443_v52 = vmul.f32 1.442695, %v440_v51 }
 0x276   :  { %763 = vpow2.f32 %v443_v52 }
 0x27c   :  { %v762_v53 = vpop.eup %761 }
 0x27d   :  { %v445_v54 = vsel %vm432_vm2, %v762_v53, 0.0 }
 0x27e   :  { %446 = vadd.xlane.f32.xlu0 %v445_v54 }
 0x280   :  { %v764_v55 = vpop.eup %763 }
 0x281   :  { %v448_v56 = vsel %vm432_vm2, %v764_v55, 0.0 }
 0x282   :  { %449 = vadd.xlane.f32.xlu1 %v448_v56 }
 0x30b   :  { %v447_v57 = vpop.xlane.xlu0 %446 }
 0x30c   :  { %765 = vrcp.f32 %v447_v57 }
 0x30f   :  { %v450_v58 = vpop.xlane.xlu1 %449 }
 0x310   :  { %767 = vrcp.f32 %v450_v58 }
 0x316   :  { %v766_v59 = vpop.eup %765 }
 0x317   :  { %v453_v60 = vmul.f32 %v766_v59, %v762_v53 }
 0x319   :  { %625 = vst.msk [vmem:[#allocation8] sm:$0xff] %vm432_vm2, %v453_v60  ;;  %728 = vmatmul.mubr.msk.f32.vlgmr.msra.gmra.mrb[4].mxu0 %vm432_vm2, %v453_v60 }
 0x31a   :  { %v768_v61 = vpop.eup %767 }
 0x31b   :  { %v454_v62 = vmul.f32 %v768_v61, %v764_v55 }
 0x31d   :  { %626 = vst.msk [vmem:[#allocation8 + $0x8] sm:$0xff] %vm432_vm2, %v454_v62  ;;  %733 = vmatmul.mubr.msk.f32.vlgmr.msra.gmra.mrb[4].mxu1 %vm432_vm2, %v454_v62 }
 0x31e   :  { %824 = shalt.err (!%p821_p6)
}
 0x31f   :  { %s825_s18 = scalar_lea.hbm %s1051_s10, 256 }
 0x320   :  { %p826_p7 = scmp.ne.s32.totalorder %s1051_s10, %s825_s18  ;;  %p829_p8 = scmp.lt.u32.totalorder %s825_s18, %s1051_s10 }
 0x322   :  { %p831_p9 = pnand %p829_p8, %p826_p7 }
 0x324   :  { %834 = shalt.err (!%p831_p9)
}
 0x325   :  { %648 = dma.vmem_to_hbm [thread:$0]  %s643_s8, 256, %s1051_s10, [#allocation9], %s866_s23, %s866_s23, %s867_s24   ;;  %vm620_vm3 = vcmask 1041409   ;;  %vm623_vm4 = vcmask 254976  }
 0x326   :  { %s873_s10 = smov [#allocation7]  }
 0x327   :  { %s633_s23 = sshll.u32 %s873_s10, 4  ;;  %s634_s23 = int_to_ptr.vmem [resolvable:$true] %s633_s23 }
 0x328   :  { %s835_s24 = scalar_lea.vmem %s634_s23, 32  ;;  %p840_p11 = scmp.lt.s32.totalorder %s634_s23, %s634_s23 }
 0x329   :  { %p836_p10 = scmp.ne.s32.totalorder %s634_s23, %s835_s24  ;;  %p841_p12 = scmp.lt.s32.totalorder %s835_s24, %s835_s24 }
 0x32b   :  { %p842_p13 = por %p841_p12, %p840_p11 }
 0x32d   :  { %p843_p0 = pnand %p842_p13, %p836_p10 }
 0x3ec   :  { %v524_v63 = vpop.f32.mrb[4].mxu0 }
 0x3ed   :  { %v601_v0 = vsel %vm80_vm0, %v524_v63, 0.0  ;;  %v729_v1 = vpop.f32.mrb[5].mxu0 }
 0x3ee   :  { %v602_v2 = vrot.slane %v601_v0, 4 }
 0x3f0   :  { %v603_v3 = vadd.f32 %v602_v2, %v601_v0  ;;  %v597_v4 = vpop.f32.mrb[4].mxu1 }
 0x3f1   :  { %v608_v5 = vsel %vm80_vm0, %v597_v4, 0.0  ;;  %v734_v6 = vpop.f32.mrb[5].mxu1 }
 0x3f2   :  { %v604_v7 = vrot.slane %v603_v3, 2  ;;  %v609_v8 = vrot.slane %v608_v5, 4 }
 0x3f4   :  { %v605_v9 = vadd.f32 %v604_v7, %v603_v3  ;;  %v610_v10 = vadd.f32 %v609_v8, %v608_v5 }
 0x3f6   :  { %v606_v11 = vrot.slane %v605_v9, 1  ;;  %v611_v12 = vrot.slane %v610_v10, 2 }
 0x3f8   :  { %v612_v13 = vadd.f32 %v611_v12, %v610_v10  ;;  %v607_v14 = vadd.f32 %v606_v11, %v605_v9 }
 0x3fa   :  { %v613_v15 = vrot.slane %v612_v13, 1  ;;  %v616_v17 = vmul.f32 0.125, %v607_v14 }
 0x3fc   :  { %v614_v16 = vadd.f32 %v613_v15, %v612_v13 }
 0x3fe   :  { %v617_v18 = vmul.f32 0.125, %v614_v16 }
 0x400   :  { %v621_v19 = vsel %vm620_vm3, %v617_v18, %v616_v17 }
 0x401   :  { %624 = vst.msk [vmem:[#allocation7] sm:$0x3] %vm623_vm4, %v621_v19 }
 0x402   :  { %846 = shalt.err (!%p843_p0)
}
 0x403   :  { %s847_s28 = scalar_lea.hbm %s1050_s9, 32 }
 0x404   :  { %p848_p1 = scmp.ne.s32.totalorder %s1050_s9, %s847_s28  ;;  %p851_p2 = scmp.lt.u32.totalorder %s847_s28, %s1050_s9 }
 0x406   :  { %p853_p3 = pnand %p851_p2, %p848_p1 }
 0x408   :  { %856 = shalt.err (!%p853_p3)
}
 0x409   :  { %636 = dma.vmem_to_hbm [thread:$0]  %s634_s23, 32, %s1050_s9, [#allocation4]  }
 0x40a   :  { %861 = dma.done.wait [#allocation4], 32  }
 0x40b   :  { %862 = vsyncadd [#allocation4], 4294967264 }
 0x40c   :  { %863 = dma.done.wait [#allocation9], 256  }
 0x40d   :  { %864 = vsyncadd [#allocation9], 4294967040 }
 0x40e   :  { %655 = vsyncpa [#allocation3], 1 }
 0x40f   :  { %656 = vsyncpa [#allocation6], 1 }
 0x410   :  { %657 = vsyncpa [#allocation4], 1 }
 0x411   :  { %658 = vsyncpa [#allocation9], 1 }

</bundles_post_ra>
